<compile_context>
chip_gen: v7x
topology: tpu7x:2x2x1
jax: 0.10.0
libtpu: 0.0.40
codegen_flags: <defaults>
</compile_context>

<pallas_src>
import numpy as np
import jax
import jax.numpy as jnp
from jax import lax
from jax.experimental import pallas as pl
from jax.experimental.pallas import tpu as pltpu

# ----------------------------- configuration --------------------------------
B = 2          # batch
IWAE = 2       # iwae_num
S_IWAE = 2     # sample_iwae_num
L = 8          # max_length
D = 4          # input_dim (ohlc)
T = 4          # number of target times
D1 = D + 1
NCH = D + 3    # data-slab channels: [x(D), t, mask, final_index]
LL_PAD = 128   # lane-dense likelihood output width

_LOG_2PI = float(np.log(2.0 * np.pi))

# packed parameter slab layout (single (8,128) f32 slab -> one DMA)
PCOL_W, PCOL_WINV = 0, 4                         # rows 0..D : W[:, :D] / Winv[:, :D]
PROW_VEC = D1                                    # row 5 holds the per-channel vectors:
PCOL_B, PCOL_MU, PCOL_SIG = 0, 4, 8              #   b[:D], mu, sigma,
PCOL_ISIG, PCOL_LSIG, PCOL_MADJ = 12, 16, 20     #   1/sigma, log(sigma), mu-0.5*sigma^2


# ------------------------------ fused kernel ---------------------------------
def _micro_ts_kernel(scal_ref, p_ref, slab_ref, tt_ref, noise_ref, xex_ref, ll_ref):
    # --- SMEM scalars (all init-time constants of the stand-in flow) ---------
    logdet_w = scal_ref[0]     # log|det W|
    aux_scale = scal_ref[1]    # Winv[D, D]          (closed-form aux)
    aux_shift = scal_ref[2]    # -(b @ Winv)[D]
    b_last = scal_ref[3]       # b[D]

    # --- packed parameter slab (one VMEM tile, static slices) ----------------
    P = p_ref[...]                                                  # (8, 128)
    w_rows = [P[i, PCOL_W:PCOL_W + D].reshape(1, 1, D) for i in range(D1)]
    winv_rows = [P[i, PCOL_WINV:PCOL_WINV + D].reshape(1, 1, D) for i in range(D1)]
    b_d = P[PROW_VEC, PCOL_B:PCOL_B + D].reshape(1, 1, D)
    mu = P[PROW_VEC, PCOL_MU:PCOL_MU + D].reshape(1, 1, D)
    sigma = P[PROW_VEC, PCOL_SIG:PCOL_SIG + D].reshape(1, 1, D)
    inv_sig = P[PROW_VEC, PCOL_ISIG:PCOL_ISIG + D].reshape(1, 1, D)
    log_sig = P[PROW_VEC, PCOL_LSIG:PCOL_LSIG + D].reshape(1, 1, D)
    mu_adj = P[PROW_VEC, PCOL_MADJ:PCOL_MADJ + D].reshape(1, 1, D)  # mu - sigma^2/2

    # --- packed data slab -----------------------------------------------------
    slab = slab_ref[...]                                   # (B, L, D+3)
    x = slab[:, :, 0:D]                                    # (B, L, D) positive prices
    t3 = slab[:, :, D:D + 1]                               # (B, L, 1)
    m3 = slab[:, :, D + 1:D + 2]                           # (B, L, 1)
    fi3 = slab[:, :, D + 2:D + 3].astype(jnp.int32)        # (B, L, 1) final_index bcast

    # ---------------- observe_to_base (activation='exp' / log_jaco) ----------
    tv = jnp.log(x)                                        # (B, L, D)
    tld = jnp.sum(tv, axis=-1, keepdims=True)              # transform_logdet (B, L, 1)
    aux = t3 * aux_scale + aux_shift                       # closed-form inverse-flow aux
    # forward flow z = [tv, aux] @ W + b  (first D cols), unrolled VPU FMAs
    z = b_d + aux * w_rows[D]
    for i in range(D):
        z = z + tv[:, :, i:i + 1] * w_rows[i]              # (B, L, D)

    # ---------------- likelihood (GBM transition density) --------------------
    logz = jnp.log(jnp.maximum(z, 1e-20))                  # guard the stand-in flow
    dt = jnp.maximum(t3[:, 1:] - t3[:, :-1], 0.0)          # (B, L-1, 1), clamp padded rows
    sqdt = jnp.maximum(jnp.sqrt(dt), 2e-5)
    rdt = 1.0 / sqdt                                       # exact reciprocal
    mean = logz[:, :-1] + mu_adj * dt                      # (B, L-1, D)
    diff = logz[:, 1:] - mean
    q = diff * inv_sig * rdt
    log_std = log_sig + jnp.log(sqdt)                      # one log per row, not per elem
    log_prob = -0.5 * q * q - log_std - 0.5 * _LOG_2PI
    obs_mask = (t3[:, 1:] != 0.0).astype(jnp.float32)      # (B, L-1, 1)
    ll = jnp.sum(log_prob * obs_mask, axis=-1, keepdims=True)      # (B, L-1, 1)
    ll = (ll - logdet_w - tld[:, 1:]) * m3[:, 1:]
    ll_b = jnp.mean(ll, axis=1)                            # (B, 1)
    # Deterministic flow => all IWAE copies identical => softmax-weighted sum
    # over iwae_num equals the per-copy value.
    ll_ref[...] = jnp.broadcast_to(ll_b, (B, LL_PAD))      # lane-dense store

    # ---------------- sde_extrapolation --------------------------------------
    iota_l = lax.broadcasted_iota(jnp.int32, (B, L, 1), 1)
    onehot = (iota_l == fi3).astype(jnp.float32)           # (B, L, 1) vectorized compare
    logz_pre = jnp.sum(onehot * logz, axis=1, keepdims=True)   # (B, 1, D) reuse logz
    t_pre = jnp.sum(onehot * t3, axis=1, keepdims=True)        # (B, 1, 1)
    tt3 = tt_ref[...]                                          # (1, T, 1)
    dte = jnp.maximum(tt3 - t_pre, 0.0)                        # (B, T, 1)
    sqe = jnp.maximum(jnp.sqrt(dte), 2e-5)
    mean_e = logz_pre + mu * dte                               # (B, T, D)
    std_e = sigma * sqe                                        # (B, T, D)
    samples = jnp.exp(mean_e[:, None] + std_e[:, None] * noise_ref[...])  # (B, I*S, T, D)
    z_mean = jnp.mean(samples, axis=1)                         # (B, T, D)

    # ---------------- base_to_observe (eval path) -----------------------------
    # IWAE / sample-IWAE means hoisted above the linear inverse flow.
    zc = z_mean - b_d
    x_rev = (tt3 - b_last) * winv_rows[D]
    for i in range(D):
        x_rev = x_rev + zc[:, :, i:i + 1] * winv_rows[i]       # (B, T, D)
    xex_ref[...] = x_rev


# --------------------------- pallas_call wrapper ------------------------------
def micro_ts_forward(params, x, t, mask, final_index, target_time, noise):
    """Eval-mode forward of MicroTimeSeriesModel, one fused Pallas kernel.

    x: (B, L, D) f32, t: (B, L, 1) f32, mask: (B, L) f32, final_index: (B,) int,
    target_time: (1, T, 1) f32, noise: (B, IWAE*S_IWAE, T, D) f32 (pre-shaped).
    """
    # Single packing op for the per-call tensors (fuses into one XLA op).
    fi_b = jnp.broadcast_to(final_index.astype(jnp.float32)[:, None, None], (B, L, 1))
    slab = jnp.concatenate([x, t, mask[:, :, None], fi_b], axis=-1)   # (B, L, D+3)

    vspec = pl.BlockSpec(memory_space=pltpu.MemorySpace.VMEM)
    sspec = pl.BlockSpec(memory_space=pltpu.MemorySpace.SMEM)

    x_extra, ll_pad = pl.pallas_call(
        _micro_ts_kernel,
        in_specs=[sspec,   # flow scalars (SMEM)
                  vspec,   # packed parameter slab (8, 128)
                  vspec,   # packed data slab (B, L, D+3)
                  vspec,   # target_time (1, T, 1)
                  vspec],  # noise (B, IWAE*S_IWAE, T, D)
        out_specs=(vspec, vspec),
        out_shape=(jax.ShapeDtypeStruct((B, T, D), jnp.float32),
                   jax.ShapeDtypeStruct((B, LL_PAD), jnp.float32)),
    )(params["scalars"], params["slab"], slab, target_time, noise)
    return x_extra, ll_pad[:, 0]


# -------------------------------- parameters ---------------------------------
def init_params():
    # mu = nn.Parameter(torch.ones(1, D) * 0)
    mu = np.zeros((1, D), np.float32)
    # pre_softplus_sigma = torch.ones(1, D) * 0.02 ; sigma = max(relu(.), 1e-5)
    pre = 0.02 * np.ones((1, D), np.float32)
    sigma = np.maximum(np.maximum(pre, 0.0), 1e-5)
    # deterministic invertible affine flow (upper-triangular => analytic logdet)
    diag = np.exp(np.linspace(0.05, 0.25, D1)).astype(np.float32)
    w = (np.diag(diag) + 0.05 * np.triu(np.ones((D1, D1), np.float32), 1)).astype(np.float32)
    winv = np.linalg.inv(w).astype(np.float32)
    b = 0.1 * np.ones((1, D1), np.float32)

    logdetw = float(np.sum(np.log(diag)))
    aux_scale = float(winv[D, D])            # inverse flow, last column, t coefficient
    aux_shift = float(-(b @ winv)[0, D])     # inverse flow, last column, offset

    slab = np.zeros((8, 128), np.float32)
    slab[0:D1, PCOL_W:PCOL_W + D] = w[:, :D]
    slab[0:D1, PCOL_WINV:PCOL_WINV + D] = winv[:, :D]
    slab[PROW_VEC, PCOL_B:PCOL_B + D] = b[0, :D]
    slab[PROW_VEC, PCOL_MU:PCOL_MU + D] = mu[0]
    slab[PROW_VEC, PCOL_SIG:PCOL_SIG + D] = sigma[0]
    slab[PROW_VEC, PCOL_ISIG:PCOL_ISIG + D] = 1.0 / sigma[0]
    slab[PROW_VEC, PCOL_LSIG:PCOL_LSIG + D] = np.log(sigma[0])
    slab[PROW_VEC, PCOL_MADJ:PCOL_MADJ + D] = mu[0] - 0.5 * sigma[0] ** 2

    scalars = np.array([logdetw, aux_scale, aux_shift, b[0, D]], np.float32)
    return {"slab": jnp.asarray(slab), "scalars": jnp.asarray(scalars)}


# ----------------------------------- main -------------------------------------
if __name__ == "__main__":
    key = jax.random.PRNGKey(0)
    k1, k2 = jax.random.split(key)
    params = init_params()

    # positive "prices" so log(.) stays finite; strictly increasing times
    x = jax.random.uniform(k1, (B, L, D), jnp.float32, 1.5, 3.0)
    t = jnp.broadcast_to(
        (jnp.arange(L, dtype=jnp.float32).reshape(1, L, 1) + 1.0) * 0.05, (B, L, 1))
    mask = jnp.ones((B, L), jnp.float32)
    final_index = jnp.array([L - 1, L - 2], dtype=jnp.int32)
    target_time = (0.5 + 0.1 * jnp.arange(1, T + 1, dtype=jnp.float32)).reshape(1, T, 1)
    noise = jax.random.normal(k2, (B, IWAE * S_IWAE, T, D), jnp.float32)

    fwd = jax.jit(micro_ts_forward)
    x_extra, likelihood = fwd(params, x, t, mask, final_index, target_time, noise)
    jax.block_until_ready((x_extra, likelihood))

    assert x_extra.shape == (B, T, D), x_extra.shape
    assert likelihood.shape == (B,), likelihood.shape
    assert bool(jnp.all(jnp.isfinite(x_extra))) and bool(jnp.all(jnp.isfinite(likelihood)))
    print("KERNEL_OK")
</pallas_src>

<mosaic_0001>
module attributes {stable_mosaic.version = 11 : i64} {
  func.func @_micro_ts_kernel(%arg0: memref<4xf32, #tpu.memory_space<smem>>, %arg1: memref<8x128xf32, #tpu.memory_space<vmem>>, %arg2: memref<2x8x7xf32, #tpu.memory_space<vmem>>, %arg3: memref<1x4x1xf32, #tpu.memory_space<vmem>>, %arg4: memref<2x4x4x4xf32, #tpu.memory_space<vmem>>, %arg5: memref<2x4x4xf32, #tpu.memory_space<vmem>>, %arg6: memref<2x128xf32, #tpu.memory_space<vmem>>) attributes {dimension_semantics = [], scalar_prefetch = 0 : i64, scratch_operands = 0 : i64, tpu.core_type = #tpu.core_type<tc>} {
    %c0 = arith.constant 0 : index
    %0 = memref.load %arg0[%c0] : memref<4xf32, #tpu.memory_space<smem>>
    %c1 = arith.constant 1 : index
    %1 = memref.load %arg0[%c1] : memref<4xf32, #tpu.memory_space<smem>>
    %c2 = arith.constant 2 : index
    %2 = memref.load %arg0[%c2] : memref<4xf32, #tpu.memory_space<smem>>
    %c3 = arith.constant 3 : index
    %3 = memref.load %arg0[%c3] : memref<4xf32, #tpu.memory_space<smem>>
    %c0_0 = arith.constant 0 : index
    %c0_1 = arith.constant 0 : index
    %4 = vector.load %arg1[%c0_0, %c0_1] : memref<8x128xf32, #tpu.memory_space<vmem>>, vector<8x128xf32>
    %5 = vector.extract_strided_slice %4 {offsets = [0, 0], sizes = [1, 4], strides = [1, 1]} : vector<8x128xf32> to vector<1x4xf32>
    %6 = vector.shape_cast %5 : vector<1x4xf32> to vector<4xf32>
    %7 = vector.shape_cast %6 : vector<4xf32> to vector<1x1x4xf32>
    %8 = vector.extract_strided_slice %4 {offsets = [1, 0], sizes = [1, 4], strides = [1, 1]} : vector<8x128xf32> to vector<1x4xf32>
    %9 = vector.shape_cast %8 : vector<1x4xf32> to vector<4xf32>
    %10 = vector.shape_cast %9 : vector<4xf32> to vector<1x1x4xf32>
    %11 = vector.extract_strided_slice %4 {offsets = [2, 0], sizes = [1, 4], strides = [1, 1]} : vector<8x128xf32> to vector<1x4xf32>
    %12 = vector.shape_cast %11 : vector<1x4xf32> to vector<4xf32>
    %13 = vector.shape_cast %12 : vector<4xf32> to vector<1x1x4xf32>
    %14 = vector.extract_strided_slice %4 {offsets = [3, 0], sizes = [1, 4], strides = [1, 1]} : vector<8x128xf32> to vector<1x4xf32>
    %15 = vector.shape_cast %14 : vector<1x4xf32> to vector<4xf32>
    %16 = vector.shape_cast %15 : vector<4xf32> to vector<1x1x4xf32>
    %17 = vector.extract_strided_slice %4 {offsets = [4, 0], sizes = [1, 4], strides = [1, 1]} : vector<8x128xf32> to vector<1x4xf32>
    %18 = vector.shape_cast %17 : vector<1x4xf32> to vector<4xf32>
    %19 = vector.shape_cast %18 : vector<4xf32> to vector<1x1x4xf32>
    %20 = vector.extract_strided_slice %4 {offsets = [0, 4], sizes = [1, 4], strides = [1, 1]} : vector<8x128xf32> to vector<1x4xf32>
    %21 = vector.shape_cast %20 : vector<1x4xf32> to vector<4xf32>
    %22 = vector.shape_cast %21 : vector<4xf32> to vector<1x1x4xf32>
    %23 = vector.extract_strided_slice %4 {offsets = [1, 4], sizes = [1, 4], strides = [1, 1]} : vector<8x128xf32> to vector<1x4xf32>
    %24 = vector.shape_cast %23 : vector<1x4xf32> to vector<4xf32>
    %25 = vector.shape_cast %24 : vector<4xf32> to vector<1x1x4xf32>
    %26 = vector.extract_strided_slice %4 {offsets = [2, 4], sizes = [1, 4], strides = [1, 1]} : vector<8x128xf32> to vector<1x4xf32>
    %27 = vector.shape_cast %26 : vector<1x4xf32> to vector<4xf32>
    %28 = vector.shape_cast %27 : vector<4xf32> to vector<1x1x4xf32>
    %29 = vector.extract_strided_slice %4 {offsets = [3, 4], sizes = [1, 4], strides = [1, 1]} : vector<8x128xf32> to vector<1x4xf32>
    %30 = vector.shape_cast %29 : vector<1x4xf32> to vector<4xf32>
    %31 = vector.shape_cast %30 : vector<4xf32> to vector<1x1x4xf32>
    %32 = vector.extract_strided_slice %4 {offsets = [4, 4], sizes = [1, 4], strides = [1, 1]} : vector<8x128xf32> to vector<1x4xf32>
    %33 = vector.shape_cast %32 : vector<1x4xf32> to vector<4xf32>
    %34 = vector.shape_cast %33 : vector<4xf32> to vector<1x1x4xf32>
    %35 = vector.extract_strided_slice %4 {offsets = [5, 0], sizes = [1, 4], strides = [1, 1]} : vector<8x128xf32> to vector<1x4xf32>
    %36 = vector.shape_cast %35 : vector<1x4xf32> to vector<4xf32>
    %37 = vector.shape_cast %36 : vector<4xf32> to vector<1x1x4xf32>
    %38 = vector.extract_strided_slice %4 {offsets = [5, 4], sizes = [1, 4], strides = [1, 1]} : vector<8x128xf32> to vector<1x4xf32>
    %39 = vector.shape_cast %38 : vector<1x4xf32> to vector<4xf32>
    %40 = vector.shape_cast %39 : vector<4xf32> to vector<1x1x4xf32>
    %41 = vector.extract_strided_slice %4 {offsets = [5, 8], sizes = [1, 4], strides = [1, 1]} : vector<8x128xf32> to vector<1x4xf32>
    %42 = vector.shape_cast %41 : vector<1x4xf32> to vector<4xf32>
    %43 = vector.shape_cast %42 : vector<4xf32> to vector<1x1x4xf32>
    %44 = vector.extract_strided_slice %4 {offsets = [5, 12], sizes = [1, 4], strides = [1, 1]} : vector<8x128xf32> to vector<1x4xf32>
    %45 = vector.shape_cast %44 : vector<1x4xf32> to vector<4xf32>
    %46 = vector.shape_cast %45 : vector<4xf32> to vector<1x1x4xf32>
    %47 = vector.extract_strided_slice %4 {offsets = [5, 16], sizes = [1, 4], strides = [1, 1]} : vector<8x128xf32> to vector<1x4xf32>
    %48 = vector.shape_cast %47 : vector<1x4xf32> to vector<4xf32>
    %49 = vector.shape_cast %48 : vector<4xf32> to vector<1x1x4xf32>
    %50 = vector.extract_strided_slice %4 {offsets = [5, 20], sizes = [1, 4], strides = [1, 1]} : vector<8x128xf32> to vector<1x4xf32>
    %51 = vector.shape_cast %50 : vector<1x4xf32> to vector<4xf32>
    %52 = vector.shape_cast %51 : vector<4xf32> to vector<1x1x4xf32>
    %c0_2 = arith.constant 0 : index
    %c0_3 = arith.constant 0 : index
    %c0_4 = arith.constant 0 : index
    %53 = vector.load %arg2[%c0_2, %c0_3, %c0_4] : memref<2x8x7xf32, #tpu.memory_space<vmem>>, vector<2x8x7xf32>
    %54 = vector.extract_strided_slice %53 {offsets = [0, 0, 0], sizes = [2, 8, 4], strides = [1, 1, 1]} : vector<2x8x7xf32> to vector<2x8x4xf32>
    %55 = vector.extract_strided_slice %53 {offsets = [0, 0, 4], sizes = [2, 8, 1], strides = [1, 1, 1]} : vector<2x8x7xf32> to vector<2x8x1xf32>
    %56 = vector.extract_strided_slice %53 {offsets = [0, 0, 5], sizes = [2, 8, 1], strides = [1, 1, 1]} : vector<2x8x7xf32> to vector<2x8x1xf32>
    %57 = vector.extract_strided_slice %53 {offsets = [0, 0, 6], sizes = [2, 8, 1], strides = [1, 1, 1]} : vector<2x8x7xf32> to vector<2x8x1xf32>
    %58 = arith.fptosi %57 : vector<2x8x1xf32> to vector<2x8x1xi32>
    %59 = math.log %54 : vector<2x8x4xf32>
    %cst = arith.constant dense<0.000000e+00> : vector<2x8xf32>
    %60 = vector.multi_reduction <add>, %59, %cst [2] : vector<2x8x4xf32> to vector<2x8xf32>
    %61 = vector.shape_cast %60 : vector<2x8xf32> to vector<2x8x1xf32>
    %62 = vector.broadcast %1 : f32 to vector<2x8x1xf32>
    %63 = arith.mulf %55, %62 : vector<2x8x1xf32>
    %64 = vector.broadcast %2 : f32 to vector<2x8x1xf32>
    %65 = arith.addf %63, %64 : vector<2x8x1xf32>
    %66 = vector.broadcast %65 : vector<2x8x1xf32> to vector<2x8x4xf32>
    %67 = vector.broadcast %19 : vector<1x1x4xf32> to vector<2x8x4xf32>
    %68 = arith.mulf %66, %67 : vector<2x8x4xf32>
    %69 = vector.broadcast %37 : vector<1x1x4xf32> to vector<2x8x4xf32>
    %70 = arith.addf %69, %68 : vector<2x8x4xf32>
    %71 = vector.extract_strided_slice %59 {offsets = [0, 0, 0], sizes = [2, 8, 1], strides = [1, 1, 1]} : vector<2x8x4xf32> to vector<2x8x1xf32>
    %72 = vector.broadcast %71 : vector<2x8x1xf32> to vector<2x8x4xf32>
    %73 = vector.broadcast %7 : vector<1x1x4xf32> to vector<2x8x4xf32>
    %74 = arith.mulf %72, %73 : vector<2x8x4xf32>
    %75 = arith.addf %70, %74 : vector<2x8x4xf32>
    %76 = vector.extract_strided_slice %59 {offsets = [0, 0, 1], sizes = [2, 8, 1], strides = [1, 1, 1]} : vector<2x8x4xf32> to vector<2x8x1xf32>
    %77 = vector.broadcast %76 : vector<2x8x1xf32> to vector<2x8x4xf32>
    %78 = vector.broadcast %10 : vector<1x1x4xf32> to vector<2x8x4xf32>
    %79 = arith.mulf %77, %78 : vector<2x8x4xf32>
    %80 = arith.addf %75, %79 : vector<2x8x4xf32>
    %81 = vector.extract_strided_slice %59 {offsets = [0, 0, 2], sizes = [2, 8, 1], strides = [1, 1, 1]} : vector<2x8x4xf32> to vector<2x8x1xf32>
    %82 = vector.broadcast %81 : vector<2x8x1xf32> to vector<2x8x4xf32>
    %83 = vector.broadcast %13 : vector<1x1x4xf32> to vector<2x8x4xf32>
    %84 = arith.mulf %82, %83 : vector<2x8x4xf32>
    %85 = arith.addf %80, %84 : vector<2x8x4xf32>
    %86 = vector.extract_strided_slice %59 {offsets = [0, 0, 3], sizes = [2, 8, 1], strides = [1, 1, 1]} : vector<2x8x4xf32> to vector<2x8x1xf32>
    %87 = vector.broadcast %86 : vector<2x8x1xf32> to vector<2x8x4xf32>
    %88 = vector.broadcast %16 : vector<1x1x4xf32> to vector<2x8x4xf32>
    %89 = arith.mulf %87, %88 : vector<2x8x4xf32>
    %90 = arith.addf %85, %89 : vector<2x8x4xf32>
    %cst_5 = arith.constant 9.99999968E-21 : f32
    %91 = vector.broadcast %cst_5 : f32 to vector<2x8x4xf32>
    %92 = arith.maximumf %90, %91 : vector<2x8x4xf32>
    %93 = math.log %92 : vector<2x8x4xf32>
    %94 = vector.extract_strided_slice %55 {offsets = [0, 1, 0], sizes = [2, 7, 1], strides = [1, 1, 1]} : vector<2x8x1xf32> to vector<2x7x1xf32>
    %95 = vector.extract_strided_slice %55 {offsets = [0, 0, 0], sizes = [2, 7, 1], strides = [1, 1, 1]} : vector<2x8x1xf32> to vector<2x7x1xf32>
    %96 = arith.subf %94, %95 : vector<2x7x1xf32>
    %cst_6 = arith.constant 0.000000e+00 : f32
    %97 = vector.broadcast %cst_6 : f32 to vector<2x7x1xf32>
    %98 = arith.maximumf %96, %97 : vector<2x7x1xf32>
    %99 = math.sqrt %98 : vector<2x7x1xf32>
    %cst_7 = arith.constant 2.000000e-05 : f32
    %100 = vector.broadcast %cst_7 : f32 to vector<2x7x1xf32>
    %101 = arith.maximumf %99, %100 : vector<2x7x1xf32>
    %cst_8 = arith.constant 1.000000e+00 : f32
    %102 = vector.broadcast %cst_8 : f32 to vector<2x7x1xf32>
    %103 = arith.divf %102, %101 : vector<2x7x1xf32>
    %104 = vector.extract_strided_slice %93 {offsets = [0, 0, 0], sizes = [2, 7, 4], strides = [1, 1, 1]} : vector<2x8x4xf32> to vector<2x7x4xf32>
    %105 = vector.broadcast %52 : vector<1x1x4xf32> to vector<2x7x4xf32>
    %106 = vector.broadcast %98 : vector<2x7x1xf32> to vector<2x7x4xf32>
    %107 = arith.mulf %105, %106 : vector<2x7x4xf32>
    %108 = arith.addf %104, %107 : vector<2x7x4xf32>
    %109 = vector.extract_strided_slice %93 {offsets = [0, 1, 0], sizes = [2, 7, 4], strides = [1, 1, 1]} : vector<2x8x4xf32> to vector<2x7x4xf32>
    %110 = arith.subf %109, %108 : vector<2x7x4xf32>
    %111 = vector.broadcast %46 : vector<1x1x4xf32> to vector<2x7x4xf32>
    %112 = arith.mulf %110, %111 : vector<2x7x4xf32>
    %113 = vector.broadcast %103 : vector<2x7x1xf32> to vector<2x7x4xf32>
    %114 = arith.mulf %112, %113 : vector<2x7x4xf32>
    %115 = math.log %101 : vector<2x7x1xf32>
    %116 = vector.broadcast %49 : vector<1x1x4xf32> to vector<2x7x4xf32>
    %117 = vector.broadcast %115 : vector<2x7x1xf32> to vector<2x7x4xf32>
    %118 = arith.addf %116, %117 : vector<2x7x4xf32>
    %cst_9 = arith.constant -5.000000e-01 : f32
    %119 = vector.broadcast %cst_9 : f32 to vector<2x7x4xf32>
    %120 = arith.mulf %119, %114 : vector<2x7x4xf32>
    %121 = arith.mulf %120, %114 : vector<2x7x4xf32>
    %122 = arith.subf %121, %118 : vector<2x7x4xf32>
    %cst_10 = arith.constant 0.918938517 : f32
    %123 = vector.broadcast %cst_10 : f32 to vector<2x7x4xf32>
    %124 = arith.subf %122, %123 : vector<2x7x4xf32>
    %125 = vector.extract_strided_slice %55 {offsets = [0, 1, 0], sizes = [2, 7, 1], strides = [1, 1, 1]} : vector<2x8x1xf32> to vector<2x7x1xf32>
    %cst_11 = arith.constant 0.000000e+00 : f32
    %126 = vector.broadcast %cst_11 : f32 to vector<2x7x1xf32>
    %127 = arith.cmpf one, %125, %126 : vector<2x7x1xf32>
    %128 = arith.extui %127 : vector<2x7x1xi1> to vector<2x7x1xi32>
    %129 = arith.sitofp %128 : vector<2x7x1xi32> to vector<2x7x1xf32>
    %130 = vector.broadcast %129 : vector<2x7x1xf32> to vector<2x7x4xf32>
    %131 = arith.mulf %124, %130 : vector<2x7x4xf32>
    %cst_12 = arith.constant dense<0.000000e+00> : vector<2x7xf32>
    %132 = vector.multi_reduction <add>, %131, %cst_12 [2] : vector<2x7x4xf32> to vector<2x7xf32>
    %133 = vector.shape_cast %132 : vector<2x7xf32> to vector<2x7x1xf32>
    %134 = vector.broadcast %0 : f32 to vector<2x7x1xf32>
    %135 = arith.subf %133, %134 : vector<2x7x1xf32>
    %136 = vector.extract_strided_slice %61 {offsets = [0, 1, 0], sizes = [2, 7, 1], strides = [1, 1, 1]} : vector<2x8x1xf32> to vector<2x7x1xf32>
    %137 = arith.subf %135, %136 : vector<2x7x1xf32>
    %138 = vector.extract_strided_slice %56 {offsets = [0, 1, 0], sizes = [2, 7, 1], strides = [1, 1, 1]} : vector<2x8x1xf32> to vector<2x7x1xf32>
    %139 = arith.mulf %137, %138 : vector<2x7x1xf32>
    %cst_13 = arith.constant dense<0.000000e+00> : vector<2x1xf32>
    %140 = vector.multi_reduction <add>, %139, %cst_13 [1] : vector<2x7x1xf32> to vector<2x1xf32>
    %cst_14 = arith.constant 7.000000e+00 : f32
    %141 = vector.broadcast %cst_14 : f32 to vector<2x1xf32>
    %142 = arith.divf %140, %141 : vector<2x1xf32>
    %143 = vector.shape_cast %142 : vector<2x1xf32> to vector<2x1xf32>
    %144 = vector.broadcast %143 : vector<2x1xf32> to vector<2x128xf32>
    %c0_15 = arith.constant 0 : index
    %c0_16 = arith.constant 0 : index
    %145 = vector.load %arg6[%c0_15, %c0_16] : memref<2x128xf32, #tpu.memory_space<vmem>>, vector<2x128xf32>
    tpu.vector_store %arg6[%c0_15, %c0_16], %144 {strides = array<i32>} : memref<2x128xf32, #tpu.memory_space<vmem>>, vector<2x128xf32>,
    %146 = tpu.iota {dimensions = array<i32: 1>} : vector<2x8x1xi32>
    %147 = arith.cmpi eq, %146, %58 : vector<2x8x1xi32>
    %148 = arith.extui %147 : vector<2x8x1xi1> to vector<2x8x1xi32>
    %149 = arith.sitofp %148 : vector<2x8x1xi32> to vector<2x8x1xf32>
    %150 = vector.broadcast %149 : vector<2x8x1xf32> to vector<2x8x4xf32>
    %151 = arith.mulf %150, %93 : vector<2x8x4xf32>
    %cst_17 = arith.constant dense<0.000000e+00> : vector<2x4xf32>
    %152 = vector.multi_reduction <add>, %151, %cst_17 [1] : vector<2x8x4xf32> to vector<2x4xf32>
    %153 = vector.shape_cast %152 : vector<2x4xf32> to vector<2x1x4xf32>
    %154 = arith.mulf %149, %55 : vector<2x8x1xf32>
    %cst_18 = arith.constant dense<0.000000e+00> : vector<2x1xf32>
    %155 = vector.multi_reduction <add>, %154, %cst_18 [1] : vector<2x8x1xf32> to vector<2x1xf32>
    %156 = vector.shape_cast %155 : vector<2x1xf32> to vector<2x1x1xf32>
    %c0_19 = arith.constant 0 : index
    %c0_20 = arith.constant 0 : index
    %c0_21 = arith.constant 0 : index
    %157 = vector.load %arg3[%c0_19, %c0_20, %c0_21] : memref<1x4x1xf32, #tpu.memory_space<vmem>>, vector<1x4x1xf32>
    %158 = vector.broadcast %157 : vector<1x4x1xf32> to vector<2x4x1xf32>
    %159 = vector.broadcast %156 : vector<2x1x1xf32> to vector<2x4x1xf32>
    %160 = arith.subf %158, %159 : vector<2x4x1xf32>
    %cst_22 = arith.constant 0.000000e+00 : f32
    %161 = vector.broadcast %cst_22 : f32 to vector<2x4x1xf32>
    %162 = arith.maximumf %160, %161 : vector<2x4x1xf32>
    %163 = math.sqrt %162 : vector<2x4x1xf32>
    %cst_23 = arith.constant 2.000000e-05 : f32
    %164 = vector.broadcast %cst_23 : f32 to vector<2x4x1xf32>
    %165 = arith.maximumf %163, %164 : vector<2x4x1xf32>
    %166 = vector.broadcast %40 : vector<1x1x4xf32> to vector<2x4x4xf32>
    %167 = vector.broadcast %162 : vector<2x4x1xf32> to vector<2x4x4xf32>
    %168 = arith.mulf %166, %167 : vector<2x4x4xf32>
    %169 = vector.broadcast %153 : vector<2x1x4xf32> to vector<2x4x4xf32>
    %170 = arith.addf %169, %168 : vector<2x4x4xf32>
    %171 = vector.broadcast %43 : vector<1x1x4xf32> to vector<2x4x4xf32>
    %172 = vector.broadcast %165 : vector<2x4x1xf32> to vector<2x4x4xf32>
    %173 = arith.mulf %171, %172 : vector<2x4x4xf32>
    %174 = vector.shape_cast %170 : vector<2x4x4xf32> to vector<2x1x4x4xf32>
    %175 = vector.shape_cast %173 : vector<2x4x4xf32> to vector<2x1x4x4xf32>
    %c0_24 = arith.constant 0 : index
    %c0_25 = arith.constant 0 : index
    %c0_26 = arith.constant 0 : index
    %c0_27 = arith.constant 0 : index
    %176 = vector.load %arg4[%c0_24, %c0_25, %c0_26, %c0_27] : memref<2x4x4x4xf32, #tpu.memory_space<vmem>>, vector<2x4x4x4xf32>
    %177 = vector.broadcast %175 : vector<2x1x4x4xf32> to vector<2x4x4x4xf32>
    %178 = arith.mulf %177, %176 : vector<2x4x4x4xf32>
    %179 = vector.broadcast %174 : vector<2x1x4x4xf32> to vector<2x4x4x4xf32>
    %180 = arith.addf %179, %178 : vector<2x4x4x4xf32>
    %181 = math.exp %180 : vector<2x4x4x4xf32>
    %cst_28 = arith.constant dense<0.000000e+00> : vector<2x4x4xf32>
    %182 = vector.multi_reduction <add>, %181, %cst_28 [1] : vector<2x4x4x4xf32> to vector<2x4x4xf32>
    %cst_29 = arith.constant 4.000000e+00 : f32
    %183 = vector.broadcast %cst_29 : f32 to vector<2x4x4xf32>
    %184 = arith.divf %182, %183 : vector<2x4x4xf32>
    %185 = vector.broadcast %37 : vector<1x1x4xf32> to vector<2x4x4xf32>
    %186 = arith.subf %184, %185 : vector<2x4x4xf32>
    %187 = vector.broadcast %3 : f32 to vector<1x4x1xf32>
    %188 = arith.subf %157, %187 : vector<1x4x1xf32>
    %189 = vector.broadcast %188 : vector<1x4x1xf32> to vector<1x4x4xf32>
    %190 = vector.broadcast %34 : vector<1x1x4xf32> to vector<1x4x4xf32>
    %191 = arith.mulf %189, %190 : vector<1x4x4xf32>
    %192 = vector.extract_strided_slice %186 {offsets = [0, 0, 0], sizes = [2, 4, 1], strides = [1, 1, 1]} : vector<2x4x4xf32> to vector<2x4x1xf32>
    %193 = vector.broadcast %192 : vector<2x4x1xf32> to vector<2x4x4xf32>
    %194 = vector.broadcast %22 : vector<1x1x4xf32> to vector<2x4x4xf32>
    %195 = arith.mulf %193, %194 : vector<2x4x4xf32>
    %196 = vector.broadcast %191 : vector<1x4x4xf32> to vector<2x4x4xf32>
    %197 = arith.addf %196, %195 : vector<2x4x4xf32>
    %198 = vector.extract_strided_slice %186 {offsets = [0, 0, 1], sizes = [2, 4, 1], strides = [1, 1, 1]} : vector<2x4x4xf32> to vector<2x4x1xf32>
    %199 = vector.broadcast %198 : vector<2x4x1xf32> to vector<2x4x4xf32>
    %200 = vector.broadcast %25 : vector<1x1x4xf32> to vector<2x4x4xf32>
    %201 = arith.mulf %199, %200 : vector<2x4x4xf32>
    %202 = arith.addf %197, %201 : vector<2x4x4xf32>
    %203 = vector.extract_strided_slice %186 {offsets = [0, 0, 2], sizes = [2, 4, 1], strides = [1, 1, 1]} : vector<2x4x4xf32> to vector<2x4x1xf32>
    %204 = vector.broadcast %203 : vector<2x4x1xf32> to vector<2x4x4xf32>
    %205 = vector.broadcast %28 : vector<1x1x4xf32> to vector<2x4x4xf32>
    %206 = arith.mulf %204, %205 : vector<2x4x4xf32>
    %207 = arith.addf %202, %206 : vector<2x4x4xf32>
    %208 = vector.extract_strided_slice %186 {offsets = [0, 0, 3], sizes = [2, 4, 1], strides = [1, 1, 1]} : vector<2x4x4xf32> to vector<2x4x1xf32>
    %209 = vector.broadcast %208 : vector<2x4x1xf32> to vector<2x4x4xf32>
    %210 = vector.broadcast %31 : vector<1x1x4xf32> to vector<2x4x4xf32>
    %211 = arith.mulf %209, %210 : vector<2x4x4xf32>
    %212 = arith.addf %207, %211 : vector<2x4x4xf32>
    %c0_30 = arith.constant 0 : index
    %c0_31 = arith.constant 0 : index
    %c0_32 = arith.constant 0 : index
    %213 = vector.load %arg5[%c0_30, %c0_31, %c0_32] : memref<2x4x4xf32, #tpu.memory_space<vmem>>, vector<2x4x4xf32>
    tpu.vector_store %arg5[%c0_30, %c0_31, %c0_32], %212 {strides = array<i32>} : memref<2x4x4xf32, #tpu.memory_space<vmem>>, vector<2x4x4xf32>,
    return
  }
}

</mosaic_0001>

<bundles_post_ra>
// kernel: micro_ts_forward.1
= control target key start
LH: loop header
LB: loop body
LE: loop exit
PB: predicated region body
PF: predicated region fallthrough
CT: control target
= control target key end

     0   :  { %12 = vsyncpa [#allocation4], 0  ;;  %s1097_s0 = inlined_call_operand.vmem [shape: f32[4], index: 0, kind: input, shape index: {}]   ;;  %s1098_s1 = inlined_call_operand.vmem [shape: f32[8,128], index: 1, kind: input, shape index: {}]   ;;  %s1099_s2 = inlined_call_operand.vmem [shape: f32[2,8,7], index: 2, kind: input, shape index: {}]   ;;  %s1100_s3 = inlined_call_operand.vmem [shape: f32[1,4,1], index: 3, kind: input, shape index: {}]   ;;  %s1101_s4 = inlined_call_operand.vmem [shape: f32[2,4,4,4], index: 4, kind: input, shape index: {}]   ;;  %s1102_s5 = inlined_call_operand.hbm [shape: f32[2,4,4], index: 5, kind: output, shape index: {0}]   ;;  %s1103_s6 = inlined_call_operand.vmem [shape: f32[2,128], index: 6, kind: output, shape index: {1}]  }
   0x1   :  { %13 = vsyncpa [#allocation3], 0  ;;  %s20_s23 = sshll.u32 %s1097_s0, 4  ;;  %s21_s23 = int_to_ptr.vmem [resolvable:$true] %s20_s23 }
   0x2   :  { %s772_s24 = scalar_lea.vmem %s21_s23, 16  ;;  %p777_p1 = scmp.lt.s32.totalorder %s21_s23, %s21_s23 }
   0x3   :  { %p773_p0 = scmp.ne.s32.totalorder %s21_s23, %s772_s24  ;;  %p778_p2 = scmp.lt.s32.totalorder %s772_s24, %s772_s24 }
   0x5   :  { %p779_p3 = por %p778_p2, %p777_p1 }
   0x7   :  { %p780_p4 = pnand %p779_p3, %p773_p0 }
   0x9   :  { %783 = shalt.err (!%p780_p4)
}
   0xa   :  { %s810_s25 = smov [#allocation2]  }
   0xb   :  { %23 = dma.vmem_to_smem %s21_s23, 16, %s810_s25, [#allocation4]  }
   0xc   :  { %806 = dma.done.wait [#allocation4], 16  }
   0xd   :  { %807 = vsyncadd [#allocation4], 4294967280 }
   0xe   :  { %35 = sfence }
   0xf   :  { %v871_v0 = vld [vmem:[%s1099_s2] sm:$0xff]  ;;  %s811_s28 = smov 2   ;;  %v877_v1 = vld [vmem:[%s1099_s2 + $0x8] sm:$0xff]  ;;  %v812_v4 = vmov 4   ;;  %s669_s2 = sld [smem:[#allocation2 + $0x1]]  ;;  %v72_v26 = vlaneseq  ;;  %v814_v34 = vmov 0.0  }
  0x10   :  { %370 = vrot.lane.b32.xlu0 %v871_v0, %s811_s28  ;;  %v158_v2 = vrot.slane %v871_v0, 7  ;;  %v159_v3 = vrot.slane %v877_v1, 7  ;;  %703 = vset.pattern.permute.xlu1 %v812_v4  ;;  %s670_s30 = sld [smem:[#allocation2 + $0x2]]  ;;  %v456_v21 = vld [vmem:[%s1101_s4] sm:$0xf]  ;;  %s813_s9 = smov 8   ;;  %v678_v27 = vtrunc.f32 %v871_v0  ;;  %v680_v30 = vtrunc.f32 %v877_v1 }
  0x11   :  { %702 = vset.pattern.permute.xlu0 %v812_v4  ;;  %v460_v22 = vld [vmem:[%s1101_s4 + $0x10] sm:$0xf]  ;;  %v458_v24 = vld [vmem:[%s1101_s4 + $0x8] sm:$0xf]  ;;  %v916_v28 = vshrl.u32 %v72_v26, 7  ;;  %vm378_vm5 = vcmask 56368  }
  0x12   :  { %v162_v5 = vsub.f32 %v871_v0, %v158_v2  ;;  %v163_v6 = vsub.f32 %v877_v1, %v159_v3  ;;  %v679_v29 = vcvt.f32.s32 %v678_v27  ;;  %v681_v32 = vcvt.f32.s32 %v680_v30  ;;  %s816_s14 = smov 122   ;;  %v457_v62 = vld [vmem:[%s1101_s4 + $0x4] sm:$0xf]  ;;  %v461_v63 = vld [vmem:[%s1101_s4 + $0x14] sm:$0xf]  ;;  %s819_s27 = smov 108  }
  0x13   :  { %v815_v47 = vmov 0   ;;  %v462_v2 = vld [vmem:[%s1101_s4 + $0x18] sm:$0xf]  ;;  %v953_v3 = vld [vmem:[%s1100_s3] sm:$0xf]  ;;  %v817_v30 = vmov 2  }
  0x14   :  { %372 = vrot.lane.b32.xlu0 %v877_v1, %s811_s28  ;;  %v164_v7 = vmax.f32 %v162_v5, 0.0  ;;  %v886_v8 = vmax.f32 %v163_v6, 0.0  ;;  %vm338_vm2 = vcmp.eq.s32.totalorder %v916_v28, %v679_v29  ;;  %vm339_vm4 = vcmp.eq.s32.totalorder %v916_v28, %v681_v32  ;;  %s823_s28 = smov 116   ;;  %s824_s0 = smov 124  }
  0x15   :  { %v56_v15 = vstv %s669_s2  ;;  %v921_v35 = vsel %vm338_vm2, 1.0, %v814_v34  ;;  %v926_v40 = vsel %vm339_vm4, 1.0, %v814_v34  ;;  %vm268_vm11 = vcmp.ne.f32.partialorder %v871_v0, 0.0  ;;  %s825_s29 = smov 120   ;;  %s671_s2 = sld [smem:[#allocation2 + $0x3]] }
  0x16   :  { %732 = vrsqrt.f32 %v886_v8  ;;  %vm175_vm0 = vcmp.eq.f32.partialorder %v886_v8, inf  ;;  %v178_v10 = vand.u32 2147483648, %v886_v8  ;;  %vm177_vm1 = vcmp.eq.f32.partialorder %v886_v8, 0.0 }
  0x17   :  { %v58_v16 = vmul.f32 %v56_v15, %v877_v1  ;;  %v59_v17 = vstv %s670_s30  ;;  %v57_v23 = vmul.f32 %v56_v15, %v871_v0  ;;  %vm168_vm3 = vcmp.eq.f32.partialorder %v164_v7, inf  ;;  %s36_s30 = sld [smem:[#allocation2]] }
  0x18   :  { %188 = vperm.xlu0 %702, %v164_v7   ;;  %v171_v37 = vand.u32 2147483648, %v164_v7  ;;  %vm170_vm6 = vcmp.eq.f32.partialorder %v164_v7, 0.0  ;;  %vm269_vm12 = vcmp.ne.f32.partialorder %v877_v1, 0.0  ;;  %vm286_vm13 = vcmask 31745  }
  0x19   :  { %v900_v18 = vadd.f32 %v59_v17, %v58_v16  ;;  %v60_v25 = vadd.f32 %v59_v17, %v57_v23  ;;  %vm49_vm14 = vcmask 31744   ;;  %vm560_vm15 = vcmask 27648  }
  0x20   :  { %v733_v9 = vpop.eup %732 }
  0x21   :  { %v174_v11 = vmul.f32 %v733_v9, %v886_v8 }
  0x23   :  { %v176_v12 = vsel %vm175_vm0, %v886_v8, %v174_v11  ;;  %vm306_vm0 = vcmask 47144  }
  0x24   :  { %v894_v13 = vsel %vm177_vm1, %v178_v10, %v176_v12  ;;  %v463_v12 = vld [vmem:[%s1101_s4 + $0x1c] sm:$0xf]  ;;  %vm332_vm1 = vcmask 1041409  }
  0x25   :  { %v181_v14 = vmax.f32 %v894_v13, 2e-05 }
  0x27   :  { %734 = vlog2.f32 %v181_v14 }
  0x28   :  { %736 = vrsqrt.f32 %v164_v7 }
  0x31   :  { %v735_v19 = vpop.eup %734 }
  0x32   :  { %v239_v20 = vmul.f32 0.6931472, %v735_v19  ;;  %v737_v31 = vpop.eup %736 }
  0x33   :  { %v167_v33 = vmul.f32 %v737_v31, %v164_v7 }
  0x34   :  { %247 = vperm.xlu0 %702, %v239_v20   ;;  %v80_v20 = vsub.s32 5, %v916_v28 }
  0x35   :  { %v169_v39 = vsel %vm168_vm3, %v164_v7, %v167_v33 }
  0x36   :  { %v928_v44 = vsel %vm170_vm6, %v171_v37, %v169_v39  ;;  %v818_v39 = vmov 3  }
  0x37   :  { %v180_v49 = vmax.f32 %v928_v44, 2e-05  ;;  %v674_v44 = vsel %vm268_vm11, 1.0, %v814_v34 }
  0x38   :  { %472 = vrot.lane.b32.xlu0 %v456_v21, %s813_s9 }
  0x39   :  { %738 = vlog2.f32 %v180_v49 }
  0x3a   :  { %740 = vlog2.f32 %v877_v1 }
  0x3c   :  { %480 = vrot.lane.b32.xlu0 %v460_v22, %s813_s9  ;;  %v970_v22 = vld [vmem:[%s1098_s1] sm:$0xff] }
  0x3d   :  { %v976_v31 = vrot.slane %v970_v22, %v80_v20 }
  0x40   :  { %476 = vrot.lane.b32.xlu0 %v458_v24, %s813_s9 }
  0x43   :  { %v739_v60 = vpop.eup %738 }
  0x44   :  { %64 = vperm.xlu0 %702, %v60_v25   ;;  %v237_v61 = vmul.f32 0.6931472, %v739_v60  ;;  %v741_v11 = vpop.eup %740 }
  0x45   :  { %v963_v15 = vmul.f32 0.6931472, %v741_v11 }
  0x48   :  { %705 = vset.pattern.permute.xlu0 %v815_v47 }
  0x82   :  { %v371_v36 = vpop.permute.xlu0 %370 }
  0x83   :  { %v376_v38 = vmul.f32 %v921_v35, %v371_v36 }
  0x85   :  { %v379_v41 = vsel %vm378_vm5, %v376_v38, 0.0 }
  0x86   :  { %v380_v42 = vrot.slane %v379_v41, 4  ;;  %v373_v43 = vpop.permute.xlu0 %372 }
  0x87   :  { %v377_v45 = vmul.f32 %v926_v40, %v373_v43 }
  0x88   :  { %v381_v46 = vadd.f32 %v380_v42, %v379_v41  ;;  %v459_v41 = vld [vmem:[%s1101_s4 + $0xc] sm:$0xf]  ;;  %s821_s4 = smov 112  }
  0x89   :  { %v386_v48 = vsel %vm378_vm5, %v377_v45, 0.0  ;;  %v820_v45 = vmov 1  }
  0x8a   :  { %v387_v50 = vrot.slane %v386_v48, 4  ;;  %v382_v51 = vrot.slane %v381_v46, 2 }
  0x8c   :  { %v388_v52 = vadd.f32 %v387_v50, %v386_v48  ;;  %v383_v53 = vadd.f32 %v382_v51, %v381_v46  ;;  %v712_v48 = vpack.i.bf16 %v926_v40, %v921_v35  ;;  %v822_v51 = vmov 6  }
  0x8e   :  { %v389_v54 = vrot.slane %v388_v52, 2  ;;  %v384_v55 = vrot.slane %v383_v53, 1 }
  0x90   :  { %v390_v56 = vadd.f32 %v389_v54, %v388_v52  ;;  %v385_v57 = vadd.f32 %v384_v55, %v383_v53 }
  0x92   :  { %396 = vrot.lane.b32.xlu1 %v385_v57, %s816_s14  ;;  %v391_v58 = vrot.slane %v390_v56, 1 }
  0x94   :  { %v392_v59 = vadd.f32 %v391_v58, %v390_v56 }
  0x96   :  { %398 = vrot.lane.b32.xlu1 %v392_v59, %s816_s14 }
  0x97   :  { %v189_v46 = vpop.permute.xlu0 %188 }
  0x98   :  { %v196_v50 = vmul.f32 %v189_v46, %v976_v31 }
  0x9a   :  { %193 = vperm.xlu1 %703, %v886_v8   ;;  %v200_v52 = vrot.slane %v196_v50, 1 }
  0x9e   :  { %242 = vperm.xlu1 %703, %v237_v61  }
  0xa2   :  { %474 = vrot.lane.b32.xlu1 %v457_v62, %s813_s9 }
  0xa6   :  { %482 = vrot.lane.b32.xlu1 %v461_v63, %s813_s9 }
  0xaa   :  { %484 = vrot.lane.b32.xlu1 %v462_v2, %s813_s9 }
  0xae   :  { %69 = vperm.xlu1 %703, %v900_v18  }
  0xb2   :  { %704 = vset.pattern.permute.xlu1 %v815_v47 }
  0xb3   :  { %v248_v40 = vpop.permute.xlu0 %247 }
  0xb4   :  { %v251_v54 = vadd.f32 %v248_v40, %v976_v31 }
  0xb7   :  { %v473_v55 = vpop.permute.xlu0 %472 }
  0xbb   :  { %v481_v57 = vpop.permute.xlu0 %480 }
  0xbf   :  { %v477_v59 = vpop.permute.xlu0 %476 }
  0xc3   :  { %v65_v61 = vpop.permute.xlu0 %64 }
 0x104   :  { %v397_v5 = vpop.permute.xlu1 %396 }
 0x105   :  { %v402_v6 = vsub.f32 %v953_v3, %v397_v5 }
 0x107   :  { %v404_v7 = vmax.f32 %v402_v6, 0.0 }
 0x108   :  { %v399_v8 = vpop.permute.xlu1 %398 }
 0x109   :  { %v403_v9 = vsub.f32 %v953_v3, %v399_v8  ;;  %424 = vperm.xlu1 %704, %v404_v7   ;;  %742 = vrsqrt.f32 %v404_v7  ;;  %vm408_vm7 = vcmp.eq.f32.partialorder %v404_v7, inf  ;;  %v411_v19 = vand.u32 2147483648, %v404_v7 }
 0x10a   :  { %744 = vlog2.f32 %v871_v0  ;;  %vm410_vm8 = vcmp.eq.f32.partialorder %v404_v7, 0.0 }
 0x10b   :  { %v405_v10 = vmax.f32 %v403_v9, 0.0 }
 0x10d   :  { %429 = vperm.xlu0 %705, %v405_v10   ;;  %746 = vrsqrt.f32 %v405_v10  ;;  %vm415_vm9 = vcmp.eq.f32.partialorder %v405_v10, inf  ;;  %v418_v29 = vand.u32 2147483648, %v405_v10  ;;  %vm417_vm10 = vcmp.eq.f32.partialorder %v405_v10, 0.0 }
 0x10e   :  { %748 = vrcp.f32 %v181_v14 }
 0x10f   :  { %750 = vrcp.f32 %v180_v49  ;;  %v675_v49 = vsel %vm269_vm12, 1.0, %v814_v34 }
 0x110   :  { %v719_v35 = vpack.i.bf16 %v675_v49, %v674_v44 }
 0x111   :  { %486 = vrot.lane.b32.xlu0 %v463_v12, %s813_s9 }
 0x113   :  { %v743_v16 = vpop.eup %742 }
 0x114   :  { %v407_v17 = vmul.f32 %v743_v16, %v404_v7  ;;  %v745_v18 = vpop.eup %744 }
 0x115   :  { %91 = vperm.xlu0 %705, %v963_v15   ;;  %v972_v27 = vmul.f32 0.6931472, %v745_v18 }
 0x116   :  { %v409_v21 = vsel %vm408_vm7, %v404_v7, %v407_v17 }
 0x117   :  { %v747_v23 = vpop.eup %746  ;;  %v412_v24 = vsel %vm410_vm8, %v411_v19, %v409_v21  ;;  %v74_v19 = vsub.s32 4, %v916_v28  ;;  %v96_v21 = vsub.s32 0, %v916_v28 }
 0x118   :  { %v420_v25 = vmax.f32 %v412_v24, 2e-05  ;;  %v414_v26 = vmul.f32 %v747_v23, %v405_v10  ;;  %v749_v14 = vpop.eup %748 }
 0x119   :  { %707 = vset.pattern.permute.xlu0 %v817_v30  ;;  %v194_v32 = vpop.permute.xlu1 %193  ;;  %v751_v53 = vpop.eup %750 }
 0x11a   :  { %446 = vperm.xlu1 %704, %v420_v25   ;;  %v416_v33 = vsel %vm415_vm9, %v405_v10, %v414_v26  ;;  %119 = vperm.xlu0 %707, %v972_v27   ;;  %v197_v37 = vmul.f32 %v194_v32, %v976_v31  ;;  %v1021_v25 = vrot.slane %v970_v22, %v74_v19 }
 0x11b   :  { %v419_v36 = vsel %vm417_vm10, %v418_v29, %v416_v33  ;;  %v112_v29 = vsub.s32 1, %v916_v28  ;;  %v1025_v32 = vrot.slane %v970_v22, %v96_v21 }
 0x11c   :  { %v421_v38 = vmax.f32 %v419_v36, 2e-05  ;;  %v201_v13 = vrot.slane %v197_v37, 1  ;;  %v144_v37 = vsub.s32 3, %v916_v28 }
 0x11d   :  { %v243_v42 = vpop.permute.xlu1 %242 }
 0x11e   :  { %451 = vperm.xlu1 %704, %v421_v38   ;;  %710 = vset.pattern.permute.xlu0 %v818_v39  ;;  %v250_v43 = vadd.f32 %v243_v42, %v976_v31  ;;  %v76_v38 = vmul.f32 %v1021_v25, %v65_v61 }
 0x11f   :  { %139 = vperm.xlu0 %710, %v963_v15  }
 0x122   :  { %478 = vrot.lane.b32.xlu1 %v459_v41, %s813_s9  ;;  %v1031_v41 = vrot.slane %v970_v22, %v112_v29  ;;  %s827_s9 = smov [#allocation5]  }
 0x123   :  { %204 = vrot.lane.b32.xlu0 %v201_v13, %s819_s27  ;;  %v128_v13 = vsub.s32 2, %v916_v28  ;;  %s653_s10 = sshll.u32 %s827_s9, 4  ;;  %s654_s10 = int_to_ptr.vmem [resolvable:$true] %s653_s10 }
 0x124   :  { %718 = vset.pattern.permute.xlu0 %v812_v4  ;;  %s784_s11 = scalar_lea.vmem %s654_s10, 128  ;;  %p789_p6 = scmp.lt.s32.totalorder %s654_s10, %s654_s10 }
 0x125   :  { %v1044_v44 = vrot.slane %v970_v22, %v128_v13  ;;  %p785_p5 = scmp.ne.s32.totalorder %s654_s10, %s784_s11  ;;  %p790_p7 = scmp.lt.s32.totalorder %s784_s11, %s784_s11 }
 0x126   :  { %86 = vperm.xlu1 %704, %v972_v27  }
 0x127   :  { %231 = vperm.xlu0 %718, %v749_v14   ;;  %p791_p8 = por %p790_p7, %p789_p6 }
 0x129   :  { %p792_p9 = pnand %p791_p8, %p785_p5 }
 0x12a   :  { %706 = vset.pattern.permute.xlu1 %v820_v45 }
 0x12b   :  { %103 = vperm.xlu1 %706, %v972_v27   ;;  %258 = vrot.lane.b32.xlu0 %v250_v43, %s821_s4 }
 0x12c   :  { %725 = vset.pattern.permute.xlu0 %v815_v47 }
 0x12f   :  { %107 = vperm.xlu1 %706, %v963_v15  }
 0x133   :  { %708 = vset.pattern.permute.xlu1 %v817_v30 }
 0x134   :  { %123 = vperm.xlu1 %708, %v963_v15  }
 0x138   :  { %709 = vset.pattern.permute.xlu1 %v818_v39 }
 0x139   :  { %135 = vperm.xlu1 %709, %v972_v27  }
 0x13d   :  { %711 = vset.pattern.permute.xlu1 %v822_v51  ;;  %v1039_v51 = vrot.slane %v970_v22, %v144_v37 }
 0x13e   :  { %713 = vperm.xlu1 %711, %v712_v48  }
 0x142   :  { %202 = vrot.lane.b32.xlu1 %v200_v52, %s819_s27  ;;  %v82_v52 = vadd.f32 %v976_v31, %v76_v38 }
 0x143   :  { %717 = vset.pattern.permute.xlu1 %v812_v4  ;;  %v475_v4 = vpop.permute.xlu1 %474 }
 0x146   :  { %226 = vperm.xlu1 %717, %v751_v53  }
 0x147   :  { %v483_v56 = vpop.permute.xlu1 %482 }
 0x14a   :  { %219 = vrot.lane.b32.xlu1 %v976_v31, %s823_s28 }
 0x14b   :  { %v485_v58 = vpop.permute.xlu1 %484 }
 0x14e   :  { %720 = vperm.xlu1 %717, %v719_v35  }
 0x14f   :  { %v70_v60 = vpop.permute.xlu1 %69 }
 0x150   :  { %v77_v36 = vmul.f32 %v1021_v25, %v70_v60 }
 0x152   :  { %260 = vrot.lane.b32.xlu1 %v251_v54, %s821_s4  ;;  %v83_v48 = vadd.f32 %v976_v31, %v77_v36 }
 0x153   :  { %724 = vset.pattern.permute.xlu1 %v815_v47 }
 0x188   :  { %v425_v34 = vpop.permute.xlu1 %424 }
 0x189   :  { %v432_v62 = vmul.f32 %v425_v34, %v976_v31 }
 0x18b   :  { %436 = vrot.lane.b32.xlu0 %v432_v62, %s824_s0 }
 0x18c   :  { %v430_v63 = vpop.permute.xlu0 %429 }
 0x18d   :  { %v433_v2 = vmul.f32 %v430_v63, %v976_v31 }
 0x18f   :  { %438 = vrot.lane.b32.xlu1 %v433_v2, %s824_s0 }
 0x190   :  { %v487_v16 = vpop.permute.xlu0 %486 }
 0x194   :  { %v92_v26 = vpop.permute.xlu0 %91 }
 0x195   :  { %v99_v42 = vmul.f32 %v1025_v32, %v92_v26 }
 0x197   :  { %v101_v49 = vadd.f32 %v99_v42, %v83_v48 }
 0x199   :  { %v447_v47 = vpop.permute.xlu1 %446  ;;  %v120_v14 = vpop.permute.xlu0 %119 }
 0x19a   :  { %v454_v5 = vmul.f32 %v447_v47, %v976_v31 }
 0x19c   :  { %v496_v6 = vmul.f32 %v473_v55, %v454_v5  ;;  %v497_v7 = vmul.f32 %v475_v4, %v454_v5  ;;  %v498_v17 = vmul.f32 %v477_v59, %v454_v5 }
 0x19d   :  { %v452_v8 = vpop.permute.xlu1 %451 }
 0x19e   :  { %v455_v9 = vmul.f32 %v452_v8, %v976_v31  ;;  %512 = vrot.lane.b32.xlu0 %v496_v6, %s825_s29  ;;  %514 = vrot.lane.b32.xlu1 %v497_v7, %s825_s29  ;;  %v140_v28 = vpop.permute.xlu0 %139 }
 0x19f   :  { %v147_v55 = vmul.f32 %v1039_v51, %v140_v28 }
 0x1a0   :  { %v500_v10 = vmul.f32 %v481_v57, %v455_v9  ;;  %v501_v11 = vmul.f32 %v483_v56, %v455_v9  ;;  %v502_v18 = vmul.f32 %v485_v58, %v455_v9  ;;  %v503_v24 = vmul.f32 %v487_v16, %v455_v9 }
 0x1a1   :  { %v479_v12 = vpop.permute.xlu1 %478  ;;  %v130_v57 = vmul.f32 %v1044_v44, %v120_v14 }
 0x1a2   :  { %520 = vrot.lane.b32.xlu0 %v500_v10, %s825_s29  ;;  %522 = vrot.lane.b32.xlu1 %v501_v11, %s825_s29  ;;  %v499_v23 = vmul.f32 %v479_v12, %v454_v5  ;;  %v205_v8 = vpop.permute.xlu0 %204 }
 0x1a5   :  { %v87_v20 = vpop.permute.xlu1 %86 }
 0x1a6   :  { %516 = vrot.lane.b32.xlu0 %v498_v17, %s825_s29  ;;  %524 = vrot.lane.b32.xlu1 %v502_v18, %s825_s29  ;;  %v98_v46 = vmul.f32 %v1025_v32, %v87_v20 }
 0x1a8   :  { %v100_v35 = vadd.f32 %v98_v46, %v82_v52 }
 0x1aa   :  { %v104_v33 = vpop.permute.xlu1 %103  ;;  %518 = vrot.lane.b32.xlu0 %v499_v23, %s825_s29  ;;  %526 = vrot.lane.b32.xlu1 %v503_v24, %s825_s29  ;;  %v232_v23 = vpop.permute.xlu0 %231 }
 0x1ab   :  { %v114_v53 = vmul.f32 %v1031_v41, %v104_v33 }
 0x1ad   :  { %v116_v56 = vadd.f32 %v114_v53, %v100_v35 }
 0x1ae   :  { %v108_v43 = vpop.permute.xlu1 %107  ;;  %v259_v48 = vpop.permute.xlu0 %258 }
 0x1af   :  { %v115_v50 = vmul.f32 %v1031_v41, %v108_v43  ;;  %v132_v61 = vadd.f32 %v130_v57, %v116_v56  ;;  %v53_v56 = vsel %vm49_vm14, %v963_v15, 0.0  ;;  %v580_v57 = vstv %s671_s2 }
 0x1b1   :  { %v117_v54 = vadd.f32 %v115_v50, %v101_v49 }
 0x1b3   :  { %v124_v40 = vpop.permute.xlu1 %123 }
 0x1b4   :  { %v131_v4 = vmul.f32 %v1044_v44, %v124_v40 }
 0x1b6   :  { %v133_v58 = vadd.f32 %v131_v4, %v117_v54 }
 0x1b8   :  { %v149_v59 = vadd.f32 %v147_v55, %v133_v58  ;;  %v136_v60 = vpop.permute.xlu1 %135  ;;  %v50_v55 = vsel %vm49_vm14, %v972_v27, 0.0  ;;  %v581_v58 = vsub.f32 %v953_v3, %v580_v57 }
 0x1b9   :  { %v146_v34 = vmul.f32 %v1039_v51, %v136_v60 }
 0x1ba   :  { %v151_v22 = vmax.f32 %v149_v59, 1e-20 }
 0x1bb   :  { %v148_v62 = vadd.f32 %v146_v34, %v132_v61 }
 0x1bc   :  { %752 = vlog2.f32 %v151_v22 }
 0x1bd   :  { %v150_v63 = vmax.f32 %v148_v62, 1e-20  ;;  %v714_v2 = vpop.permute.xlu1 %713 }
 0x1be   :  { %v716_v5 = vunpack.i.h.bf16 %v714_v2  ;;  %v715_v59 = vunpack.i.l.bf16 %v714_v2 }
 0x1bf   :  { %754 = vlog2.f32 %v150_v63 }
 0x1c1   :  { %v203_v47 = vpop.permute.xlu1 %202 }
 0x1c5   :  { %v227_v6 = vpop.permute.xlu1 %226 }
 0x1c6   :  { %v753_v7 = vpop.eup %752 }
 0x1c7   :  { %v155_v9 = vmul.f32 0.6931472, %v753_v7 }
 0x1c9   :  { %v755_v10 = vpop.eup %754  ;;  %v355_v11 = vmul.f32 %v716_v5, %v155_v9  ;;  %v209_v12 = vadd.f32 %v205_v8, %v155_v9  ;;  %v220_v16 = vpop.permute.xlu1 %219 }
 0x1ca   :  { %v153_v17 = vmul.f32 0.6931472, %v755_v10 }
 0x1cb   :  { %v213_v18 = vrot.slane %v209_v12, 7  ;;  %v363_v22 = vsel %vm49_vm14, %v355_v11, 0.0 }
 0x1cc   :  { %v208_v19 = vadd.f32 %v203_v47, %v153_v17  ;;  %v354_v60 = vmul.f32 %v715_v59, %v153_v17  ;;  %v364_v63 = vrot.slane %v363_v22, 4 }
 0x1cd   :  { %v217_v20 = vsub.f32 %v155_v9, %v213_v18  ;;  %v721_v24 = vpop.permute.xlu1 %720 }
 0x1ce   :  { %v212_v21 = vrot.slane %v208_v19, 7  ;;  %v723_v43 = vunpack.i.h.bf16 %v721_v24  ;;  %v722_v53 = vunpack.i.l.bf16 %v721_v24  ;;  %v356_v61 = vsel %vm49_vm14, %v354_v60, 0.0 }
 0x1cf   :  { %v223_v26 = vmul.f32 %v220_v16, %v217_v20  ;;  %v357_v34 = vrot.slane %v356_v61, 4  ;;  %v365_v5 = vadd.f32 %v364_v63, %v363_v22 }
 0x1d0   :  { %v216_v29 = vsub.f32 %v153_v17, %v212_v21 }
 0x1d1   :  { %v235_v33 = vmul.f32 %v232_v23, %v223_v26  ;;  %v261_v13 = vpop.permute.xlu1 %260  ;;  %v358_v62 = vadd.f32 %v357_v34, %v356_v61  ;;  %v366_v7 = vrot.slane %v365_v5, 2 }
 0x1d2   :  { %v222_v36 = vmul.f32 %v220_v16, %v216_v29 }
 0x1d3   :  { %v253_v37 = vmul.f32 -0.5, %v235_v33  ;;  %v359_v47 = vrot.slane %v358_v62, 2  ;;  %v367_v8 = vadd.f32 %v366_v7, %v365_v5 }
 0x1d4   :  { %v234_v38 = vmul.f32 %v227_v6, %v222_v36 }
 0x1d5   :  { %v255_v14 = vmul.f32 %v253_v37, %v235_v33  ;;  %v360_v6 = vadd.f32 %v359_v47, %v358_v62  ;;  %v368_v12 = vrot.slane %v367_v8, 1 }
 0x1d6   :  { %v252_v42 = vmul.f32 -0.5, %v234_v38 }
 0x1d7   :  { %v265_v46 = vsub.f32 %v255_v14, %v261_v13  ;;  %v361_v27 = vrot.slane %v360_v6, 1  ;;  %v369_v18 = vadd.f32 %v368_v12, %v367_v8 }
 0x1d8   :  { %v254_v50 = vmul.f32 %v252_v42, %v234_v38 }
 0x1d9   :  { %v673_v52 = vadd.f32 -0.9189385, %v265_v46  ;;  %v362_v10 = vadd.f32 %v361_v27, %v360_v6 }
 0x1da   :  { %v264_v28 = vsub.f32 %v254_v50, %v259_v48 }
 0x1db   :  { %v285_v49 = vmul.f32 %v723_v43, %v673_v52 }
 0x1dc   :  { %v672_v35 = vadd.f32 -0.9189385, %v264_v28 }
 0x1dd   :  { %v290_v40 = vsel %vm286_vm13, %v285_v49, 0.0 }
 0x1de   :  { %291 = vadd.xlane.f32.xlu1 %v290_v40  ;;  %v284_v54 = vmul.f32 %v722_v53, %v672_v35 }
 0x1e0   :  { %v287_v4 = vsel %vm286_vm13, %v284_v54, 0.0 }
 0x1e1   :  { %288 = vadd.xlane.f32.xlu0 %v287_v4 }
 0x1e5   :  { %51 = vadd.xlane.f32.xlu0 %v50_v55 }
 0x1e9   :  { %54 = vadd.xlane.f32.xlu0 %v53_v56 }
 0x1ef   :  { %584 = vperm.xlu1 %724, %v581_v58  }
 0x1fd   :  { %v437_v9 = vpop.permute.xlu0 %436 }
 0x1fe   :  { %v442_v16 = vadd.f32 %v437_v9, %v362_v10 }
 0x201   :  { %v439_v15 = vpop.permute.xlu1 %438 }
 0x202   :  { %v443_v20 = vadd.f32 %v439_v15, %v369_v18 }
 0x210   :  { %v515_v3 = vpop.permute.xlu1 %514  ;;  %v513_v2 = vpop.permute.xlu0 %512 }
 0x211   :  { %v537_v17 = vadd.f32 %v515_v3, %v442_v16  ;;  %v536_v19 = vadd.f32 %v513_v2, %v442_v16 }
 0x213   :  { %v546_v11 = vmul.f32 1.442695, %v537_v17  ;;  %v544_v21 = vmul.f32 1.442695, %v536_v19 }
 0x214   :  { %v523_v23 = vpop.permute.xlu1 %522  ;;  %v521_v24 = vpop.permute.xlu0 %520 }
 0x215   :  { %v541_v26 = vadd.f32 %v523_v23, %v443_v20  ;;  %v540_v29 = vadd.f32 %v521_v24, %v443_v20  ;;  %756 = vpow2.f32 %v546_v11 }
 0x216   :  { %758 = vpow2.f32 %v544_v21 }
 0x217   :  { %v554_v33 = vmul.f32 1.442695, %v541_v26  ;;  %v552_v36 = vmul.f32 1.442695, %v540_v29 }
 0x218   :  { %v525_v37 = vpop.permute.xlu1 %524  ;;  %v517_v38 = vpop.permute.xlu0 %516 }
 0x219   :  { %760 = vpow2.f32 %v554_v33  ;;  %v542_v13 = vadd.f32 %v525_v37, %v443_v20  ;;  %v538_v14 = vadd.f32 %v517_v38, %v442_v16 }
 0x21a   :  { %762 = vpow2.f32 %v552_v36 }
 0x21b   :  { %v556_v42 = vmul.f32 1.442695, %v542_v13  ;;  %v548_v43 = vmul.f32 1.442695, %v538_v14 }
 0x21c   :  { %v527_v46 = vpop.permute.xlu1 %526  ;;  %v519_v48 = vpop.permute.xlu0 %518 }
 0x21d   :  { %764 = vpow2.f32 %v556_v42  ;;  %v543_v50 = vadd.f32 %v527_v46, %v443_v20  ;;  %v539_v52 = vadd.f32 %v519_v48, %v442_v16  ;;  %v826_v16 = vmov 5  }
 0x21e   :  { %766 = vpow2.f32 %v548_v43 }
 0x21f   :  { %v558_v53 = vmul.f32 1.442695, %v543_v50  ;;  %v550_v28 = vmul.f32 1.442695, %v539_v52  ;;  %v757_v49 = vpop.eup %756 }
 0x220   :  { %v759_v35 = vpop.eup %758  ;;  %v562_v57 = vsel %vm560_vm15, %v757_v49, 0.0 }
 0x221   :  { %768 = vpow2.f32 %v558_v53  ;;  %v561_v58 = vsel %vm560_vm15, %v759_v35, 0.0 }
 0x222   :  { %770 = vpow2.f32 %v550_v28  ;;  %v563_v22 = vadd.f32 %v562_v57, %v561_v58 }
 0x223   :  { %v761_v40 = vpop.eup %760 }
 0x224   :  { %v763_v54 = vpop.eup %762  ;;  %v569_v4 = vsel %vm560_vm15, %v761_v40, 0.0 }
 0x225   :  { %v568_v55 = vsel %vm560_vm15, %v763_v54, 0.0 }
 0x226   :  { %v570_v61 = vadd.f32 %v569_v4, %v568_v55 }
 0x227   :  { %v765_v56 = vpop.eup %764 }
 0x228   :  { %v767_v59 = vpop.eup %766  ;;  %v571_v60 = vsel %vm560_vm15, %v765_v56, 0.0 }
 0x229   :  { %v564_v34 = vsel %vm560_vm15, %v767_v59, 0.0  ;;  %v572_v63 = vadd.f32 %v571_v60, %v570_v61 }
 0x22a   :  { %v565_v6 = vadd.f32 %v564_v34, %v563_v22 }
 0x22b   :  { %v769_v62 = vpop.eup %768 }
 0x22c   :  { %v771_v47 = vpop.eup %770  ;;  %v573_v5 = vsel %vm560_vm15, %v769_v62, 0.0 }
 0x22d   :  { %v574_v7 = vadd.f32 %v573_v5, %v572_v63  ;;  %v566_v27 = vsel %vm560_vm15, %v771_v47, 0.0 }
 0x22e   :  { %v567_v8 = vadd.f32 %v566_v27, %v565_v6 }
 0x22f   :  { %v577_v9 = vmul.f32 0.25, %v574_v7 }
 0x230   :  { %v576_v15 = vmul.f32 0.25, %v567_v8 }
 0x231   :  { %v579_v10 = vsub.f32 %v577_v9, %v976_v31 }
 0x232   :  { %v578_v12 = vsub.f32 %v576_v15, %v976_v31  ;;  %v293_v31 = vstv %s36_s30 }
 0x233   :  { %595 = vperm.xlu1 %724, %v579_v10  }
 0x234   :  { %590 = vperm.xlu0 %725, %v578_v12  }
 0x237   :  { %726 = vset.pattern.permute.xlu1 %v820_v45 }
 0x238   :  { %603 = vperm.xlu1 %726, %v578_v12   ;;  %730 = vset.pattern.permute.xlu0 %v826_v16 }
 0x23c   :  { %607 = vperm.xlu1 %726, %v579_v10  }
 0x240   :  { %727 = vset.pattern.permute.xlu1 %v817_v30 }
 0x241   :  { %615 = vperm.xlu1 %727, %v578_v12  }
 0x245   :  { %619 = vperm.xlu1 %727, %v579_v10  }
 0x249   :  { %728 = vset.pattern.permute.xlu1 %v818_v39 }
 0x24a   :  { %627 = vperm.xlu1 %728, %v578_v12  }
 0x24e   :  { %631 = vperm.xlu1 %728, %v579_v10  }
 0x252   :  { %729 = vset.pattern.permute.xlu1 %v826_v16 }
 0x26b   :  { %v292_v18 = vpop.xlane.xlu1 %291 }
 0x26c   :  { %v295_v19 = vsub.f32 %v292_v18, %v293_v31 }
 0x26e   :  { %v289_v3 = vpop.xlane.xlu0 %288 }
 0x26f   :  { %v294_v2 = vsub.f32 %v289_v3, %v293_v31 }
 0x272   :  { %v52_v17 = vpop.xlane.xlu0 %51 }
 0x273   :  { %v296_v45 = vsub.f32 %v294_v2, %v52_v17 }
 0x275   :  { %v298_v20 = vmul.f32 %v296_v45, %v871_v0 }
 0x276   :  { %v55_v11 = vpop.xlane.xlu0 %54 }
 0x277   :  { %v302_v30 = vrot.slane %v298_v20, 1  ;;  %v297_v21 = vsub.f32 %v295_v19, %v55_v11 }
 0x279   :  { %v307_v23 = vsel %vm306_vm0, %v302_v30, 0.0  ;;  %v299_v24 = vmul.f32 %v297_v21, %v877_v1  ;;  %v585_v1 = vpop.permute.xlu1 %584 }
 0x27a   :  { %v308_v26 = vrot.slane %v307_v23, 4  ;;  %v587_v55 = vmul.f32 %v585_v1, %v1021_v25 }
 0x27b   :  { %v303_v29 = vrot.slane %v299_v24, 1 }
 0x27c   :  { %v309_v33 = vadd.f32 %v308_v26, %v307_v23 }
 0x27d   :  { %v314_v36 = vsel %vm306_vm0, %v303_v29, 0.0 }
 0x27e   :  { %v310_v37 = vrot.slane %v309_v33, 2  ;;  %v315_v38 = vrot.slane %v314_v36, 4 }
 0x280   :  { %v316_v13 = vadd.f32 %v315_v38, %v314_v36  ;;  %v311_v14 = vadd.f32 %v310_v37, %v309_v33 }
 0x282   :  { %v317_v42 = vrot.slane %v316_v13, 2  ;;  %v312_v43 = vrot.slane %v311_v14, 1 }
 0x284   :  { %v313_v46 = vadd.f32 %v312_v43, %v311_v14  ;;  %v318_v48 = vadd.f32 %v317_v42, %v316_v13 }
 0x286   :  { %v322_v0 = vmul.f32 0.14285715, %v313_v46  ;;  %v319_v50 = vrot.slane %v318_v48, 1 }
 0x288   :  { %326 = vperm.xlu1 %729, %v322_v0   ;;  %v320_v52 = vadd.f32 %v319_v50, %v318_v48 }
 0x28a   :  { %v323_v53 = vmul.f32 0.14285715, %v320_v52 }
 0x28c   :  { %330 = vperm.xlu0 %730, %v323_v53  }
 0x290   :  { %731 = vset.pattern.permute.xlu0 %v818_v39 }
 0x2b2   :  { %v596_v28 = vpop.permute.xlu1 %595 }
 0x2b3   :  { %v591_v40 = vpop.permute.xlu0 %590  ;;  %v599_v58 = vmul.f32 %v596_v28, %v1025_v32 }
 0x2b4   :  { %v598_v4 = vmul.f32 %v591_v40, %v1025_v32 }
 0x2b5   :  { %v601_v22 = vadd.f32 %v599_v58, %v587_v55 }
 0x2b6   :  { %v600_v59 = vadd.f32 %v598_v4, %v587_v55 }
 0x2b7   :  { %v604_v49 = vpop.permute.xlu1 %603 }
 0x2b8   :  { %v610_v56 = vmul.f32 %v604_v49, %v1031_v41 }
 0x2ba   :  { %v612_v61 = vadd.f32 %v610_v56, %v600_v59 }
 0x2bb   :  { %v608_v35 = vpop.permute.xlu1 %607 }
 0x2bc   :  { %v611_v39 = vmul.f32 %v608_v35, %v1031_v41 }
 0x2be   :  { %v613_v5 = vadd.f32 %v611_v39, %v601_v22 }
 0x2c0   :  { %v616_v54 = vpop.permute.xlu1 %615 }
 0x2c1   :  { %v622_v60 = vmul.f32 %v616_v54, %v1044_v44 }
 0x2c3   :  { %v624_v62 = vadd.f32 %v622_v60, %v612_v61 }
 0x2c4   :  { %v620_v57 = vpop.permute.xlu1 %619 }
 0x2c5   :  { %v623_v63 = vmul.f32 %v620_v57, %v1044_v44 }
 0x2c7   :  { %v625_v7 = vadd.f32 %v623_v63, %v613_v5 }
 0x2c9   :  { %v628_v34 = vpop.permute.xlu1 %627 }
 0x2ca   :  { %v634_v47 = vmul.f32 %v628_v34, %v1039_v51 }
 0x2cc   :  { %v636_v25 = vadd.f32 %v634_v47, %v624_v62 }
 0x2cd   :  { %v632_v6 = vpop.permute.xlu1 %631 }
 0x2ce   :  { %v635_v27 = vmul.f32 %v632_v6, %v1039_v51  ;;  %640 = vrot.lane.b32.xlu1 %v636_v25, %s824_s0 }
 0x2d0   :  { %v637_v32 = vadd.f32 %v635_v27, %v625_v7 }
 0x2d2   :  { %642 = vrot.lane.b32.xlu1 %v637_v32, %s824_s0 }
 0x307   :  { %v327_v41 = vpop.permute.xlu1 %326 }
 0x30b   :  { %v331_v8 = vpop.permute.xlu0 %330 }
 0x30c   :  { %v333_v9 = vsel %vm332_vm1, %v331_v8, %v327_v41 }
 0x30d   :  { %335 = vst [vmem:[%s1103_s6] sm:$0x3] %v333_v9 }
 0x340   :  { %v641_v44 = vpop.permute.xlu1 %640 }
 0x341   :  { %646 = vst.msk [vmem:[#allocation5] sm:$0xf] %vm560_vm15, %v641_v44 }
 0x344   :  { %v643_v51 = vpop.permute.xlu1 %642 }
 0x345   :  { %647 = vst.msk [vmem:[#allocation5 + $0x4] sm:$0xf] %vm560_vm15, %v643_v51 }
 0x346   :  { %795 = shalt.err (!%p792_p9)
}
 0x347   :  { %s796_s6 = scalar_lea.hbm %s1102_s5, 128 }
 0x348   :  { %p797_p10 = scmp.ne.s32.totalorder %s1102_s5, %s796_s6  ;;  %p800_p11 = scmp.lt.u32.totalorder %s796_s6, %s1102_s5 }
 0x34a   :  { %p802_p12 = pnand %p800_p11, %p797_p10 }
 0x34c   :  { %805 = shalt.err (!%p802_p12)
}
 0x34d   :  { %s828_s18 = smov 64   ;;  %s829_s19 = smov 4  }
 0x34e   :  { %659 = dma.vmem_to_hbm [thread:$0]  %s654_s10, 128, %s1102_s5, [#allocation3], %s828_s18, %s828_s18, %s829_s19  }
 0x34f   :  { %808 = dma.done.wait [#allocation3], 128  }
 0x350   :  { %809 = vsyncadd [#allocation3], 4294967168 }
 0x351   :  { %667 = vsyncpa [#allocation3], 1 }
 0x352   :  { %668 = vsyncpa [#allocation4], 1 }

</bundles_post_ra>
